<compile_context>
chip_gen: v6e
topology: v6e:2x2x1
jax: 0.10.0
libtpu: 0.0.40
codegen_flags: <defaults>
</compile_context>

<pallas_src>
import functools

import jax
import jax.numpy as jnp
from jax import lax
from jax.experimental import pallas as pl
from jax.experimental.pallas import tpu as pltpu

EPS = 1e-5


# ---------------------------------------------------------------------------
# helpers
# ---------------------------------------------------------------------------
def _round_up(v, m):
    return ((v + m - 1) // m) * m


def _pick_tile(total, want, *, min_tiles=1):
    """Largest tile (preferring multiples of 256, falling back to 128) that
    divides `total`, is <= want, and leaves at least `min_tiles` tiles."""
    cap = total // min_tiles
    if cap < 128:
        cap = total
    want = max(min(want, cap, total), 128)
    for step in (256, 128):
        t = (want // step) * step
        while t >= step:
            if total % t == 0:
                return t
            t -= step
    return total


def _vmem_ceiling_bytes():
    """3/4 of physical per-core VMEM (headroom for Mosaic internal scratch)."""
    cap = 64 << 20
    try:
        info = pltpu.get_tpu_info()
        cap = int(getattr(info, "vmem_capacity_bytes", cap))
    except Exception:
        pass
    return (cap * 3) // 4


def _vmem_limit(block_bytes, ceiling):
    need = int(block_bytes) + (8 << 20)
    return int(min(max(need, 32 << 20), ceiling))


def _pad_to(a, shape):
    if tuple(a.shape) == tuple(shape):
        return a
    out = jnp.zeros(shape, a.dtype)
    return out.at[tuple(slice(0, s) for s in a.shape)].set(a)


# ---------------------------------------------------------------------------
# stage 0: h = relu(bn1(x)) -> bf16, computed once, tiled over features
# ---------------------------------------------------------------------------
def _bn1_relu_kernel(n_valid, n_pad, x_ref, bn1_ref, h_ref):
    inv_n = 1.0 / float(n_valid)
    x = x_ref[...].astype(jnp.float32)                       # (n_pad, tf)

    m = jnp.sum(x, axis=0, keepdims=True) * inv_n             # true-N divisor
    xc = x - m
    if n_valid != n_pad:
        row = lax.broadcasted_iota(jnp.int32, (n_pad, 1), 0)
        xc = jnp.where(row < n_valid, xc, 0.0)                # mask pad rows
    var = jnp.sum(xc * xc, axis=0, keepdims=True) * inv_n     # two-pass variance

    h = xc * lax.rsqrt(var + EPS)
    h = h * bn1_ref[0:1, :] + bn1_ref[1:2, :]
    h = jnp.maximum(h, 0.0)                                   # relu
    if n_valid != n_pad:
        h = jnp.where(row < n_valid, h, 0.0)                  # keep pad rows zero
    h_ref[...] = h.astype(h_ref.dtype)                        # bf16 to HBM


# ---------------------------------------------------------------------------
# stage 1: h2 = relu(bn2(h @ W1^T))   (K-tiled matmul, BN in finalize)
# ---------------------------------------------------------------------------
def _stage1_kernel(n_valid, n_pad, h_ref, w1t_ref, bn2_ref, h2_ref, acc_ref):
    @pl.when(pl.program_id(1) == 0)
    def _():
        acc_ref[...] = jnp.zeros_like(acc_ref)

    # fc1 bias intentionally dropped: it cancels under bn2's mean subtraction.
    acc_ref[...] += jnp.dot(h_ref[...], w1t_ref[...],
                            preferred_element_type=jnp.float32)

    @pl.when(pl.program_id(1) == pl.num_programs(1) - 1)
    def _():
        inv_n = 1.0 / float(n_valid)
        a = acc_ref[...]                                      # (n_pad, tn1) f32
        m = jnp.sum(a, axis=0, keepdims=True) * inv_n
        ac = a - m
        if n_valid != n_pad:
            row = lax.broadcasted_iota(jnp.int32, (n_pad, 1), 0)
            ac = jnp.where(row < n_valid, ac, 0.0)
        var = jnp.sum(ac * ac, axis=0, keepdims=True) * inv_n
        h2 = ac * lax.rsqrt(var + EPS)
        h2 = h2 * bn2_ref[0:1, :] + bn2_ref[1:2, :]
        h2 = jnp.maximum(h2, 0.0)                             # relu
        if n_valid != n_pad:
            h2 = jnp.where(row < n_valid, h2, 0.0)
        h2_ref[...] = h2.astype(h2_ref.dtype)                 # bf16 to HBM


# ---------------------------------------------------------------------------
# stage 2: out = h2 @ W2^T + b2 + x
# ---------------------------------------------------------------------------
def _stage2_resident_kernel(h2_ref, w2t_ref, b2_ref, x_ref, o_ref):
    # h2 full-K resident (constant index map): read from HBM once, no K axis.
    o_ref[...] = (jnp.dot(h2_ref[...], w2t_ref[...],
                          preferred_element_type=jnp.float32)
                  + b2_ref[...]
                  + x_ref[...].astype(jnp.float32)).astype(o_ref.dtype)


def _stage2_ktiled_kernel(h2_ref, w2t_ref, b2_ref, x_ref, o_ref, acc_ref):
    @pl.when(pl.program_id(1) == 0)
    def _():
        acc_ref[...] = jnp.zeros_like(acc_ref)

    acc_ref[...] += jnp.dot(h2_ref[...], w2t_ref[...],
                            preferred_element_type=jnp.float32)

    @pl.when(pl.program_id(1) == pl.num_programs(1) - 1)
    def _():
        o_ref[...] = (acc_ref[...] + b2_ref[...]
                      + x_ref[...].astype(jnp.float32)).astype(o_ref.dtype)


# ---------------------------------------------------------------------------
# wrapper
# ---------------------------------------------------------------------------
def residual_forward(x, params, *, tile_f=512, tile_n1=512, tile_k1=512,
                     tile_n2=512, tile_k2=512):
    """x: (N, F) float32.  params: dict of BN/Linear parameters (PyTorch layout)."""
    N, F = x.shape
    n_pad = _round_up(max(N, 16), 16)          # bf16 sublane packing
    f_pad = _round_up(max(F, 256), 256)        # 256-multiple tiles (2x256 MXU)

    ceiling = _vmem_ceiling_bytes()

    x_p = _pad_to(x.astype(jnp.float32), (n_pad, f_pad))
    bn1 = _pad_to(jnp.stack([params["bn1_gamma"], params["bn1_beta"]])
                  .astype(jnp.float32), (2, f_pad))
    bn2 = _pad_to(jnp.stack([params["bn2_gamma"], params["bn2_beta"]])
                  .astype(jnp.float32), (2, f_pad))
    # weights: pad, transpose (x @ W^T), cast to bf16 for the MXU
    w1t = _pad_to(params["fc1_w"].astype(jnp.float32),
                  (f_pad, f_pad)).T.astype(jnp.bfloat16)
    w2t = _pad_to(params["fc2_w"].astype(jnp.float32),
                  (f_pad, f_pad)).T.astype(jnp.bfloat16)
    b2 = _pad_to(params["fc2_b"].reshape(1, -1).astype(jnp.float32), (1, f_pad))
    # NOTE: params["fc1_b"] is deliberately unused (exact no-op under bn2).

    # >=2 tiles on every "parallel" feature axis (v7x dual-TC).
    tf = _pick_tile(f_pad, tile_f, min_tiles=2)
    tn1 = _pick_tile(f_pad, tile_n1, min_tiles=2)
    tk1 = _pick_tile(f_pad, tile_k1)
    tn2 = _pick_tile(f_pad, tile_n2, min_tiles=2)
    tk2 = _pick_tile(f_pad, tile_k2)

    # ---- stage 0: h = relu(bn1(x)) computed once ----
    blk0 = (2 * (n_pad * tf * 4 + 2 * tf * 4 + n_pad * tf * 2)
            + 3 * n_pad * tf * 4)                              # + temporaries
    h = pl.pallas_call(
        functools.partial(_bn1_relu_kernel, N, n_pad),
        out_shape=jax.ShapeDtypeStruct((n_pad, f_pad), jnp.bfloat16),
        grid_spec=pltpu.PrefetchScalarGridSpec(
            num_scalar_prefetch=0,
            grid=(f_pad // tf,),
            in_specs=[
                pl.BlockSpec((n_pad, tf), lambda j: (0, j)),   # x feature tile
                pl.BlockSpec((2, tf), lambda j: (0, j)),       # bn1 gamma/beta
            ],
            out_specs=pl.BlockSpec((n_pad, tf), lambda j: (0, j)),
        ),
        compiler_params=pltpu.CompilerParams(
            dimension_semantics=("parallel",),
            vmem_limit_bytes=_vmem_limit(blk0, ceiling)),
    )(x_p, bn1)

    # ---- stage 1: h2 = relu(bn2(h @ W1^T)) ----
    blk1 = (2 * (n_pad * tk1 * 2 + tk1 * tn1 * 2 + 2 * tn1 * 4 + n_pad * tn1 * 2)
            + n_pad * tn1 * 4          # accumulator scratch
            + 3 * n_pad * tn1 * 4)     # finalize temporaries
    h2 = pl.pallas_call(
        functools.partial(_stage1_kernel, N, n_pad),
        out_shape=jax.ShapeDtypeStruct((n_pad, f_pad), jnp.bfloat16),
        grid_spec=pltpu.PrefetchScalarGridSpec(
            num_scalar_prefetch=0,
            grid=(f_pad // tn1, f_pad // tk1),
            in_specs=[
                pl.BlockSpec((n_pad, tk1), lambda j, k: (0, k)),  # h K tile
                pl.BlockSpec((tk1, tn1), lambda j, k: (k, j)),    # W1^T tile
                pl.BlockSpec((2, tn1), lambda j, k: (0, j)),      # bn2 gamma/beta
            ],
            out_specs=pl.BlockSpec((n_pad, tn1), lambda j, k: (0, j)),
            scratch_shapes=[pltpu.VMEM((n_pad, tn1), jnp.float32)],
        ),
        compiler_params=pltpu.CompilerParams(
            dimension_semantics=("parallel", "arbitrary"),
            vmem_limit_bytes=_vmem_limit(blk1, ceiling)),
    )(h, w1t, bn2)

    # ---- stage 2: out = h2 @ W2^T + b2 + x ----
    h2_bytes = n_pad * f_pad * 2
    blk2_res = (h2_bytes                                        # resident, counted once
                + 2 * (f_pad * tn2 * 2 + tn2 * 4 + n_pad * tn2 * 4 + n_pad * tn2 * 4)
                + n_pad * tn2 * 4)                              # dot temporary
    if blk2_res + (8 << 20) <= ceiling:
        out_p = pl.pallas_call(
            _stage2_resident_kernel,
            out_shape=jax.ShapeDtypeStruct((n_pad, f_pad), jnp.float32),
            grid_spec=pltpu.PrefetchScalarGridSpec(
                num_scalar_prefetch=0,
                grid=(f_pad // tn2,),
                in_specs=[
                    pl.BlockSpec((n_pad, f_pad), lambda j: (0, 0)),  # h2 resident
                    pl.BlockSpec((f_pad, tn2), lambda j: (0, j)),    # W2^T col tile
                    pl.BlockSpec((1, tn2), lambda j: (0, j)),        # fc2 bias tile
                    pl.BlockSpec((n_pad, tn2), lambda j: (0, j)),    # residual x tile
                ],
                out_specs=pl.BlockSpec((n_pad, tn2), lambda j: (0, j)),
            ),
            compiler_params=pltpu.CompilerParams(
                dimension_semantics=("parallel",),
                vmem_limit_bytes=_vmem_limit(blk2_res, ceiling)),
        )(h2, w2t, b2, x_p)
    else:
        blk2 = (2 * (n_pad * tk2 * 2 + tk2 * tn2 * 2 + tn2 * 4
                     + n_pad * tn2 * 4 + n_pad * tn2 * 4)
                + n_pad * tn2 * 4)
        out_p = pl.pallas_call(
            _stage2_ktiled_kernel,
            out_shape=jax.ShapeDtypeStruct((n_pad, f_pad), jnp.float32),
            grid_spec=pltpu.PrefetchScalarGridSpec(
                num_scalar_prefetch=0,
                grid=(f_pad // tn2, f_pad // tk2),
                in_specs=[
                    pl.BlockSpec((n_pad, tk2), lambda j, k: (0, k)),  # h2 K tile
                    pl.BlockSpec((tk2, tn2), lambda j, k: (k, j)),    # W2^T tile
                    pl.BlockSpec((1, tn2), lambda j, k: (0, j)),      # fc2 bias tile
                    pl.BlockSpec((n_pad, tn2), lambda j, k: (0, j)),  # residual x
                ],
                out_specs=pl.BlockSpec((n_pad, tn2), lambda j, k: (0, j)),
                scratch_shapes=[pltpu.VMEM((n_pad, tn2), jnp.float32)],
            ),
            compiler_params=pltpu.CompilerParams(
                dimension_semantics=("parallel", "arbitrary"),
                vmem_limit_bytes=_vmem_limit(blk2, ceiling)),
        )(h2, w2t, b2, x_p)

    return out_p[:N, :F]


# TODO(synk): batch(M)-axis tiling (per-feature stats accumulation pass) is needed
# before very large N; all blocks currently span the full (padded) batch axis.
# TODO(synk): BatchNorm1d running_mean/running_var buffer updates (training-mode
# side effect) are not reproduced; only the forward output is computed.


# ---------------------------------------------------------------------------
# params + pure-JAX reference
# ---------------------------------------------------------------------------
def init_params(key, num_features):
    """PyTorch-default-style init (BN: gamma=1, beta=0; Linear: U(+/-1/sqrt(F)))."""
    k1, k2, k3, k4 = jax.random.split(key, 4)
    bound = 1.0 / jnp.sqrt(num_features)
    return {
        "bn1_gamma": jnp.ones((num_features,), jnp.float32),
        "bn1_beta": jnp.zeros((num_features,), jnp.float32),
        "fc1_w": jax.random.uniform(k1, (num_features, num_features),
                                    jnp.float32, -bound, bound),
        "fc1_b": jax.random.uniform(k2, (num_features,), jnp.float32, -bound, bound),
        "bn2_gamma": jnp.ones((num_features,), jnp.float32),
        "bn2_beta": jnp.zeros((num_features,), jnp.float32),
        "fc2_w": jax.random.uniform(k3, (num_features, num_features),
                                    jnp.float32, -bound, bound),
        "fc2_b": jax.random.uniform(k4, (num_features,), jnp.float32, -bound, bound),
    }


def residual_ref(x, p):
    """Pure-JAX f32 reference (includes fc1 bias; it cancels under bn2)."""
    def bn(v, g, b):
        m = jnp.mean(v, axis=0, keepdims=True)
        var = jnp.mean((v - m) ** 2, axis=0, keepdims=True)
        return (v - m) / jnp.sqrt(var + EPS) * g + b

    h = jax.nn.relu(bn(x, p["bn1_gamma"], p["bn1_beta"]))
    a = h @ p["fc1_w"].T + p["fc1_b"]
    h2 = jax.nn.relu(bn(a, p["bn2_gamma"], p["bn2_beta"]))
    b = h2 @ p["fc2_w"].T + p["fc2_b"]
    return b + x


if __name__ == "__main__":
    key = jax.random.PRNGKey(0)
    kx, kp = jax.random.split(key)

    # small shapes: batch multiple of 16 (bf16 packing), features multiple of 256
    N, F = 16, 256
    x = jax.random.normal(kx, (N, F), jnp.float32)
    params = init_params(kp, F)

    out = residual_forward(x, params)
    out = jax.block_until_ready(out)

    ref = residual_ref(x, params)
    assert out.shape == (N, F) and out.dtype == jnp.float32
    max_err = float(jnp.max(jnp.abs(out - ref)))
    # bf16 MXU operands (f32 accumulation) -> relaxed tolerance vs f32 reference
    assert max_err < 5e-2, f"mismatch vs JAX reference: max abs err {max_err}"

    print("KERNEL_OK")
</pallas_src>

<mosaic_0001>
module attributes {stable_mosaic.version = 11 : i64} {
  func.func @_bn1_relu_kernel(%arg0: i32, %arg1: memref<16x128xf32, #tpu.memory_space<vmem>>, %arg2: memref<2x128xf32, #tpu.memory_space<vmem>>, %arg3: memref<16x128xbf16, #tpu.memory_space<vmem>>) attributes {dimension_semantics = [#tpu.dimension_semantics<parallel>], iteration_bounds = array<i64: 2>, scalar_prefetch = 0 : i64, scratch_operands = 0 : i64, tpu.core_type = #tpu.core_type<tc>, window_params = [{transform_indices = @transform_0, window_bounds = array<i64: 16, 128>}, {transform_indices = @transform_1, window_bounds = array<i64: 2, 128>}, {transform_indices = @transform_2, window_bounds = array<i64: 16, 128>}]} {
    %c0 = arith.constant 0 : index
    %c0_0 = arith.constant 0 : index
    %0 = vector.load %arg1[%c0, %c0_0] : memref<16x128xf32, #tpu.memory_space<vmem>>, vector<16x128xf32>
    %cst = arith.constant dense<0.000000e+00> : vector<128xf32>
    %1 = vector.multi_reduction <add>, %0, %cst [0] : vector<16x128xf32> to vector<128xf32>
    %2 = vector.shape_cast %1 : vector<128xf32> to vector<1x128xf32>
    %cst_1 = arith.constant 6.250000e-02 : f32
    %3 = vector.broadcast %cst_1 : f32 to vector<1x128xf32>
    %4 = arith.mulf %2, %3 : vector<1x128xf32>
    %5 = vector.broadcast %4 : vector<1x128xf32> to vector<16x128xf32>
    %6 = arith.subf %0, %5 : vector<16x128xf32>
    %7 = arith.mulf %6, %6 : vector<16x128xf32>
    %cst_2 = arith.constant dense<0.000000e+00> : vector<128xf32>
    %8 = vector.multi_reduction <add>, %7, %cst_2 [0] : vector<16x128xf32> to vector<128xf32>
    %9 = vector.shape_cast %8 : vector<128xf32> to vector<1x128xf32>
    %cst_3 = arith.constant 6.250000e-02 : f32
    %10 = vector.broadcast %cst_3 : f32 to vector<1x128xf32>
    %11 = arith.mulf %9, %10 : vector<1x128xf32>
    %cst_4 = arith.constant 9.99999974E-6 : f32
    %12 = vector.broadcast %cst_4 : f32 to vector<1x128xf32>
    %13 = arith.addf %11, %12 : vector<1x128xf32>
    %14 = math.rsqrt %13 : vector<1x128xf32>
    %15 = vector.broadcast %14 : vector<1x128xf32> to vector<16x128xf32>
    %16 = arith.mulf %6, %15 : vector<16x128xf32>
    %c0_5 = arith.constant 0 : index
    %c0_6 = arith.constant 0 : index
    %17 = vector.load %arg2[%c0_5, %c0_6] : memref<2x128xf32, #tpu.memory_space<vmem>>, vector<1x128xf32>
    %18 = vector.broadcast %17 : vector<1x128xf32> to vector<16x128xf32>
    %19 = arith.mulf %16, %18 : vector<16x128xf32>
    %c1 = arith.constant 1 : index
    %c0_7 = arith.constant 0 : index
    %20 = vector.load %arg2[%c1, %c0_7] : memref<2x128xf32, #tpu.memory_space<vmem>>, vector<1x128xf32>
    %21 = vector.broadcast %20 : vector<1x128xf32> to vector<16x128xf32>
    %22 = arith.addf %19, %21 : vector<16x128xf32>
    %cst_8 = arith.constant 0.000000e+00 : f32
    %23 = vector.broadcast %cst_8 : f32 to vector<16x128xf32>
    %24 = arith.maximumf %22, %23 : vector<16x128xf32>
    %25 = arith.truncf %24 : vector<16x128xf32> to vector<16x128xbf16>
    %c0_9 = arith.constant 0 : index
    %c0_10 = arith.constant 0 : index
    %26 = vector.load %arg3[%c0_9, %c0_10] : memref<16x128xbf16, #tpu.memory_space<vmem>>, vector<16x128xbf16>
    tpu.vector_store %arg3[%c0_9, %c0_10], %25 {strides = array<i32>} : memref<16x128xbf16, #tpu.memory_space<vmem>>, vector<16x128xbf16>,
    return
  }
  func.func @transform_0(%arg0: i32) -> (i32, i32) {
    %c0_i32 = arith.constant 0 : i32
    %c0_i32_0 = arith.constant 0 : i32
    return %c0_i32, %arg0 : i32, i32
  }
  func.func @transform_1(%arg0: i32) -> (i32, i32) {
    %c0_i32 = arith.constant 0 : i32
    %c0_i32_0 = arith.constant 0 : i32
    return %c0_i32, %arg0 : i32, i32
  }
  func.func @transform_2(%arg0: i32) -> (i32, i32) {
    %c0_i32 = arith.constant 0 : i32
    %c0_i32_0 = arith.constant 0 : i32
    return %c0_i32, %arg0 : i32, i32
  }
}

</mosaic_0001>

<bundles_post_ra>
// kernel: tpu_custom_call.1
= control target key start
LH: loop header
LB: loop body
LE: loop exit
PB: predicated region body
PF: predicated region fallthrough
CT: control target
= control target key end

     0   :  { %7 = vsyncpa [#allocation3], 0  ;;  %s802_s0 = inlined_call_operand.hbm [shape: f32[16,256], index: 0, kind: input, shape index: {}]   ;;  %s803_s1 = inlined_call_operand.hbm [shape: f32[2,256], index: 1, kind: input, shape index: {}]   ;;  %s804_s2 = inlined_call_operand.hbm [shape: bf16[16,256], index: 2, kind: output, shape index: {}]  }
   0x1   :  { %9 = vsyncpa [#allocation3 + $0x1], 0 }
   0x2   :  { %10 = vsyncpa [#allocation6], 0 }
   0x3   :  { %12 = vsyncpa [#allocation6 + $0x1], 0 }
   0x4   :  { %13 = vsyncpa [#allocation4], 0 }
   0x5   :  { %15 = vsyncpa [#allocation4 + $0x1], 0  ;;  %s594_s9 = smov 0   ;;  %s596_s10 = smov 0  }
   0x6   :  { %s598_s11 = smov 0   ;;  %s600_s12 = smov 0  }
   0x7 LB: > { %s615_s13 = sadd.s32 4294967295, %s568_s12   ;;  %s359_s14 = sadd.s32 4294967294, %s568_s12   ;;  %s568_s12 = sphi %s600_s12, %s822_s12   ;;  %s564_s11 = sphi %s598_s11, %s821_s11   ;;  %s560_s10 = sphi %s596_s10, %s820_s10   ;;  %s556_s9 = sphi %s594_s9, %s819_s9  }
   0x8   : > { %s619_s15 = sadd.s32 1, %s568_s12   ;;  %s28_s16 = sadd.s32 1, %s564_s11 }
   0x9   : > { %s25_s17 = ssub.s32 %s568_s12, %s619_s15  ;;  %p35_p0 = scmp.ne.s32.totalorder %s564_s11, %s560_s10 }
   0xa   : > { %p26_p1 = scmp.eq.s32.totalorder %s25_s17, 0  ;;  %p36_p2 = scmp.eq.s32.totalorder %s568_s12, 0 }
   0xb   : > { %p41_p3 = scmp.ne.s32.totalorder %s560_s10, %s556_s9  ;;  %p42_p4 = scmp.eq.s32.totalorder %s615_s13, 0 }
   0xc   : > { %s631_s18 = scalar_select %p26_p1, %s564_s11, %s28_s16  }
   0xd   : > { %p633_p5 = por %p36_p2, %p35_p0  ;;  %p637_p6 = por %p42_p4, %p41_p3 }
   0xe   : > { %p91_p7 = scmp.eq.s32.totalorder %s615_s13, 1  ;;  %p97_p8 = scmp.eq.s32.totalorder %s359_s14, 1 }
   0xf   : > { %s808_s20 = scalar_select %p637_p6, 1, 0 }
  0x10   : > { %p402_p10 = scmp.lt.s32.totalorder %s568_s12, 2  ;;  %p644_p11 = por %p91_p7, %p35_p0 }
  0x11   : > { %p648_p12 = por %p97_p8, %p41_p3  ;;  %s653_s23 = sand.u32 1, %s564_s11  }
  0x12   : > { %s809_s21 = scalar_select %p644_p11, 1, 0 }
  0x13   : > { %s810_s22 = scalar_select %p648_p12, 1, 0 }
  0x14   : > { %s363_s24 = sshll.u32 %s568_s12, 7  ;;  %s362_s25 = sshll.u32 %s653_s23, 4 }
  0x15   : > { %s660_s28 = scalar_lea.hbm %s802_s0, %s363_s24  ;;  %s121_s29 = scalar_lea.vmem [#allocation2], %s362_s25 }
  0x16   : > { %s127_s30 = sshll.u32 %s121_s29, 4  ;;  %p664_p13 = pnand %p402_p10, %p633_p5  ;;  %s668_s30 = int_to_ptr.vmem [resolvable:$true] %s127_s30 }
  0x17   : > { %s118_s4 = scalar_lea.sflag [#allocation3], %s653_s23  ;;  %s444_s5 = scalar_lea.hbm %s660_s28, 256 }
  0x18   : > { %p445_p1 = scmp.ne.s32.totalorder %s660_s28, %s444_s5  ;;  %p446_p2 = pneg %p664_p13 }
  0x19   : > { %s449_s8 = scalar_lea.hbm %s802_s0, 512  ;;  %p450_p5 = scmp.lt.s32.totalorder %s660_s28, %s802_s0 }
  0x1a   : > { %p447_p3 = pnand %p446_p2, %p445_p1  ;;  %p451_p7 = scmp.lt.s32.totalorder %s449_s8, %s444_s5 }
  0x1c   : > { %p448_p4 = pneg %p447_p3  ;;  %p452_p8 = por %p451_p7, %p450_p5 }
  0x1e   : > { %p453_p10 = pnand %p452_p8, %p448_p4 }
  0x20   : > { %456 = shalt.err (!%p453_p10)
}
  0x21   : > { %s457_s17 = scalar_lea.vmem %s668_s30, 256  ;;  %s570_s19 = smov [#allocation2]  }
  0x22   : > { %p458_p9 = scmp.ne.s32.totalorder %s668_s30, %s457_s17  ;;  %s462_s24 = sshll.u32 %s570_s19, 4  ;;  %s463_s24 = int_to_ptr.vmem [resolvable:$false] %s462_s24 }
  0x23   : > { %s464_s25 = scalar_lea.vmem %s463_s24, 512  ;;  %p465_p0 = scmp.lt.s32.totalorder %s668_s30, %s463_s24 }
  0x24   : > { %p460_p1 = pnand %p458_p9, %p446_p2  ;;  %p466_p12 = scmp.lt.s32.totalorder %s464_s25, %s457_s17 }
  0x26   : > { %p461_p3 = pneg %p460_p1  ;;  %p467_p11 = por %p466_p12, %p465_p0 }
  0x28   : > { %p468_p5 = pnand %p467_p11, %p461_p3 }
  0x2a   : > { %471 = shalt.err (!%p468_p5)
}
  0x2b   : > { %s571_s26 = smov 256   ;;  %s572_s27 = smov 128  }
  0x2c   : > { %s573_s29 = smov 8   ;;  %p153_p9 = scmp.lt.s32.totalorder %s568_s12, 3 }
  0x2d   : > { %394 = dma.hbm_to_vmem [thread:$0]  (!%p664_p13), %s660_s28, 256, %s668_s30, %s118_s4, %s571_s26, %s572_s27, %s573_s29  }
  0x2e   : > { %s364_s5 = sshll.u32 %s653_s23, 1  ;;  %s365_s6 = sshll.u32 %s568_s12, 5 }
  0x2f   : > { %p812_p11 = scmp.ge.s32.totalorder %s568_s12, 1  ;;  %s710_s16 = scalar_lea.hbm %s803_s1, %s365_s6 }
  0x30   : > { %s141_s17 = scalar_lea.vmem [#allocation5], %s364_s5  ;;  %s138_s28 = scalar_lea.sflag [#allocation6], %s653_s23 }
  0x31   : > { %p703_p12 = pnand %p812_p11, %p153_p9  ;;  %s148_s19 = sshll.u32 %s141_s17, 4  ;;  %s149_s19 = int_to_ptr.vmem [resolvable:$true] %s148_s19 }
  0x32   : > { %s472_s30 = scalar_lea.hbm %s710_s16, 32  ;;  %s477_s25 = scalar_lea.hbm %s803_s1, 64 }
  0x33   : > { %s813_s7 = scalar_select %p703_p12, 1, 0 }
  0x34   : > { %p473_p0 = scmp.ne.s32.totalorder %s710_s16, %s472_s30  ;;  %p478_p8 = scmp.lt.s32.totalorder %s710_s16, %s803_s1 }
  0x35   : > { %p479_p10 = scmp.lt.s32.totalorder %s477_s25, %s472_s30 }
  0x36   : > { %p475_p4 = pnand %p473_p0, %p446_p2 }
  0x37   : > { %p480_p1 = por %p479_p10, %p478_p8 }
  0x38   : > { %p476_p7 = pneg %p475_p4 }
  0x3a   : > { %p481_p3 = pnand %p480_p1, %p476_p7 }
  0x3c   : > { %484 = shalt.err (!%p481_p3)
}
  0x3d   : > { %s485_s29 = scalar_lea.vmem %s149_s19, 32  ;;  %s574_s23 = smov [#allocation5]  }
  0x3e   : > { %p486_p5 = scmp.ne.s32.totalorder %s149_s19, %s485_s29  ;;  %s490_s5 = sshll.u32 %s574_s23, 4  ;;  %s491_s5 = int_to_ptr.vmem [resolvable:$false] %s490_s5 }
  0x3f   : > { %s492_s6 = scalar_lea.vmem %s491_s5, 64  ;;  %p493_p0 = scmp.lt.s32.totalorder %s149_s19, %s491_s5 }
  0x40   : > { %p488_p9 = pnand %p486_p5, %p446_p2  ;;  %p494_p4 = scmp.lt.s32.totalorder %s492_s6, %s485_s29 }
  0x42   : > { %p489_p11 = pneg %p488_p9  ;;  %p495_p6 = por %p494_p4, %p493_p0 }
  0x44   : > { %p496_p12 = pnand %p495_p6, %p489_p11 }
  0x46   : > { %499 = shalt.err (!%p496_p12)
}
  0x47   : > { %397 = dma.hbm_to_vmem [thread:$0]  (!%p664_p13), %s710_s16, 32, %s149_s19, %s138_s28  }
  0x48   : > { %p814_p7 = scmp.ne.s32.totalorder %s813_s7, 0 }
  0x49   : > { %s734_s8 = sand.u32 (!%p814_p7), 1, %s560_s10   ;;  %p815_p2 = scmp.ne.s32.totalorder (!%p814_p7), %s808_s20, 0 }
  0x4a   : > { %157 = sbr.rel (%p814_p7) target bundleno = 161 (0xa1), region = 28  ;;  %s367_s14 = sshll.u32 (!%p814_p7), %s734_s8, 4 }
  0x4b   : > { %s160_s17 = scalar_lea.sflag (!%p814_p7), [#allocation3], %s734_s8  ;;  %s163_s30 = scalar_lea.vmem (!%p814_p7), [#allocation2], %s367_s14 }
  0x4f   : > { %543 = dma.done.wait (%p815_p2), %s160_s17, 256  }
  0x50   : > { %545 = vsyncadd (%p815_p2), %s160_s17, 4294967040  ;;  %s368_s3 = sshll.u32 %s734_s8, 1  ;;  %s169_s7 = scalar_lea.sflag [#allocation6], %s734_s8 }
  0x51   : > { %s744_s16 = scalar_lea.vmem [#allocation5], %s368_s3 }
  0x52   : > { %547 = dma.done.wait (%p815_p2), %s169_s7, 32  }
  0x53   : > { %549 = vsyncadd (%p815_p2), %s169_s7, 4294967264  ;;  %v198_v0 = vld [vmem:[%s163_s30] sm:$0xff]  ;;  %v199_v1 = vld [vmem:[%s163_s30 + $0x8] sm:$0xff]  ;;  %s369_s20 = sshll.u32 %s734_s8, 3  ;;  %s375_s19 = sshll.u32 %s615_s13, 6 }
  0x54   : > { %v200_v2 = vadd.f32 %v199_v1, %v198_v0  ;;  %v370_v24 = vld [vmem:[%s744_s16] ss:$0 sm:$0xff]  ;;  %v371_v27 = vld [vmem:[%s744_s16 + $0x1] ss:$0 sm:$0xff]  ;;  %s197_s28 = scalar_lea.vmem [#allocation7], %s369_s20  ;;  %s757_s26 = scalar_lea.hbm %s804_s2, %s375_s19 }
  0x55   : > { %s263_s4 = sshll.u32 %s197_s28, 4  ;;  %s251_s27 = scalar_lea.sflag [#allocation4], %s734_s8  ;;  %s759_s4 = int_to_ptr.vmem [resolvable:$true] %s263_s4 }
  0x56   : > { %v201_v3 = vrot.slane %v200_v2, 4  ;;  %s500_s13 = scalar_lea.vmem %s759_s4, 128  ;;  %p816_p13 = scmp.ne.s32.totalorder %s809_s21, 0 }
  0x57   : > { %p501_p6 = scmp.ne.s32.totalorder %s759_s4, %s500_s13  ;;  %s575_s29 = smov [#allocation7]  }
  0x58   : > { %v202_v4 = vadd.f32 %v201_v3, %v200_v2  ;;  %s504_s23 = sshll.u32 %s575_s29, 4  ;;  %s505_s23 = int_to_ptr.vmem [resolvable:$false] %s504_s23 }
  0x59   : > { %p502_p12 = pnand %p501_p6, %p816_p13  ;;  %s506_s5 = scalar_lea.vmem %s505_s23, 256 }
  0x5a   : > { %v203_v5 = vrot.slane %v202_v4, 2  ;;  %p507_p10 = scmp.lt.s32.totalorder %s759_s4, %s505_s23  ;;  %p508_p1 = scmp.lt.s32.totalorder %s506_s5, %s500_s13 }
  0x5b   : > { %p503_p8 = pneg %p502_p12 }
  0x5c   : > { %v204_v6 = vadd.f32 %v203_v5, %v202_v4  ;;  %p509_p3 = por %p508_p1, %p507_p10 }
  0x5e   : > { %v205_v7 = vrot.slane %v204_v6, 1  ;;  %p510_p5 = pnand %p509_p3, %p503_p8 }
  0x60   : > { %v206_v8 = vadd.f32 %v205_v7, %v204_v6 }
  0x62   : > { %v207_v9 = vmul.f32 0.0625, %v206_v8 }
  0x64   : > { %v208_v10 = vsub.f32 %v198_v0, %v207_v9  ;;  %v209_v11 = vsub.f32 %v199_v1, %v207_v9 }
  0x66   : > { %v210_v12 = vmul.f32 %v208_v10, %v208_v10  ;;  %v211_v13 = vmul.f32 %v209_v11, %v209_v11 }
  0x68   : > { %v212_v14 = vadd.f32 %v211_v13, %v210_v12 }
  0x6a   : > { %v213_v15 = vrot.slane %v212_v14, 4 }
  0x6c   : > { %v214_v16 = vadd.f32 %v213_v15, %v212_v14 }
  0x6e   : > { %v215_v17 = vrot.slane %v214_v16, 2 }
  0x70   : > { %v216_v18 = vadd.f32 %v215_v17, %v214_v16 }
  0x72   : > { %v217_v19 = vrot.slane %v216_v18, 1 }
  0x74   : > { %v218_v20 = vadd.f32 %v217_v19, %v216_v18 }
  0x76   : > { %v219_v21 = vmul.f32 0.0625, %v218_v20 }
  0x78   : > { %v220_v22 = vadd.f32 1e-05, %v219_v21 }
  0x7a   : > { %442 = vrsqrt.f32 %v220_v22 }
  0x87   : > { %v443_v23 = vpop.eup %442 }
  0x88   : > { %v222_v25 = vmul.f32 %v443_v23, %v208_v10  ;;  %v223_v26 = vmul.f32 %v443_v23, %v209_v11 }
  0x8a   : > { %v229_v28 = vmul.f32 %v370_v24, %v222_v25  ;;  %v230_v29 = vmul.f32 %v370_v24, %v223_v26 }
  0x8c   : > { %v236_v30 = vadd.f32 %v371_v27, %v229_v28  ;;  %v237_v31 = vadd.f32 %v371_v27, %v230_v29 }
  0x8e   : > { %v238_v32 = vmax.f32 %v236_v30, 0.0  ;;  %v239_v33 = vmax.f32 %v237_v31, 0.0 }
  0x90   : > { %v383_v34 = vpack.c.bf16 %v239_v33, %v238_v32 }
  0x92   : > { %384 = vst [vmem:[%s197_s28] sm:$0xff] %v383_v34  }
  0x93   : > { %513 = shalt.err (!%p510_p5)
}
  0x94   : > { %s514_s6 = scalar_lea.hbm %s757_s26, 128  ;;  %s518_s30 = scalar_lea.hbm %s804_s2, 256 }
  0x95   : > { %p515_p9 = scmp.ne.s32.totalorder %s757_s26, %s514_s6  ;;  %p519_p4 = scmp.lt.s32.totalorder %s757_s26, %s804_s2 }
  0x96   : > { %p520_p7 = scmp.lt.s32.totalorder %s518_s30, %s514_s6 }
  0x97   : > { %p516_p11 = pnand %p515_p9, %p816_p13 }
  0x98   : > { %p521_p2 = por %p520_p7, %p519_p4 }
  0x99   : > { %p517_p0 = pneg %p516_p11 }
  0x9b   : > { %p522_p6 = pnand %p521_p2, %p517_p0 }
  0x9d   : > { %525 = shalt.err (!%p522_p6)
}
  0x9e   : > { %s576_s16 = smov 64   ;;  %s577_s20 = smov 128  }
  0x9f   : > { %s578_s19 = smov 4  }
  0xa0   : > { %389 = dma.vmem_to_hbm [thread:$0]  (%p816_p13), %s759_s4, 128, %s757_s26, %s251_s27, %s576_s16, %s577_s20, %s578_s19  }
  0xa1 PF: > { %s278_s28 = sand.u32 1, %s556_s9   ;;  %p817_p12 = scmp.ne.s32.totalorder %s810_s22, 0 }
  0xa2   : > { %p818_p8 = scmp.ge.s32.totalorder %s568_s12, 2  ;;  %s279_s24 = scalar_lea.sflag [#allocation4], %s278_s28 }
  0xa4   : > { %p399_p10 = pnand %p818_p8, %p817_p12 }
  0xa6   : > { %p400_p1 = pneg %p399_p10 }
  0xa8   : > { %551 = dma.done.wait (%p400_p1), %s279_s24, 128  }
  0xa9   : > { %553 = vsyncadd (%p400_p1), %s279_s24, 4294967168  ;;  %p18_p3 = scmp.ge.s32.totalorder %s619_s15, 4   ;;  %s819_s9 = smov %s560_s10 }
  0xaa   : > { %s820_s10 = smov %s564_s11  ;;  %s821_s11 = smov %s631_s18 }
  0xab   : > { %s822_s12 = smov %s619_s15  ;;  %20 = sbr.rel (!%p18_p3) target bundleno = 7 (0x7), region = 86 }
  0xb0   :  { %284 = vsyncpa [#allocation3], 1 }
  0xb1   :  { %286 = vsyncpa [#allocation3 + $0x1], 1 }
  0xb2   :  { %287 = vsyncpa [#allocation6], 1 }
  0xb3   :  { %289 = vsyncpa [#allocation6 + $0x1], 1 }
  0xb4   :  { %290 = vsyncpa [#allocation4], 1 }
  0xb5   :  { %292 = vsyncpa [#allocation4 + $0x1], 1 }

</bundles_post_ra>
